<compile_context>
chip_gen: v7x
topology: tpu7x:2x2x1
jax: 0.10.0
libtpu: 0.0.40
codegen_flags: <defaults>
</compile_context>

<pallas_src>
import functools

import jax
import jax.numpy as jnp
from jax.experimental import pallas as pl
from jax.experimental.pallas import tpu as pltpu

LANE = 128           # TPU lane width: pad all matmul output dims to this
DEFAULT_TILE_M = 512  # batch tile; sized to fit v7x's 64 MiB VMEM comfortably


def _round_up(n, m):
    return ((n + m - 1) // m) * m


def _logreg_kernel(x_ref, w1_ref, b1_ref, w2_ref, b2_ref, w3_ref, b3_ref,
                   out_ref):
    """One batch tile: fc1+relu -> fc2+relu -> fc3, fully fused in VMEM."""
    cdt = w2_ref.dtype  # compute dtype fed to the MXU (f32 or bf16)

    # fc1 + relu (accumulate in f32 on the MXU, bias/relu on the VPU in f32)
    h1 = jnp.dot(x_ref[...], w1_ref[...], preferred_element_type=jnp.float32)
    h1 = jnp.maximum(h1 + b1_ref[...], 0.0)
    # (dropout: identity in eval mode)

    # fc2 + relu
    h2 = jnp.dot(h1.astype(cdt), w2_ref[...],
                 preferred_element_type=jnp.float32)
    h2 = jnp.maximum(h2 + b2_ref[...], 0.0)
    # (dropout: identity in eval mode)

    # fc3 — lane-dense (padded-to-128) output slab, unmasked store
    out = jnp.dot(h2.astype(cdt), w3_ref[...],
                  preferred_element_type=jnp.float32)
    out_ref[...] = (out + b3_ref[...]).astype(out_ref.dtype)


@functools.partial(jax.jit,
                   static_argnames=("nb_classes", "tile_m", "compute_dtype"))
def logreg_forward(x, w1, b1, w2, b2, w3, b3, *, nb_classes,
                   tile_m=DEFAULT_TILE_M, compute_dtype=jnp.float32):
    """x: (B, ft_in). Weights pre-transposed to (in, out) and zero-padded so
    every `out` dim is a multiple of 128 (see pad_logreg_params). Biases are
    (1, out_padded) float32. Returns (B, nb_classes)."""
    B, ft_in = x.shape
    out_dtype = x.dtype
    cdt = jnp.dtype(compute_dtype)
    ncls_pad = w3.shape[1]

    # Cast the MXU operands (keeps f32 accumulation inside the kernel).
    xc = x.astype(cdt)
    w1c, w2c, w3c = w1.astype(cdt), w2.astype(cdt), w3.astype(cdt)

    # Batch tiling: tile must be a multiple of 8 (sublane) and divide B_pad.
    tm = _round_up(min(tile_m, _round_up(B, 8)), 8)
    B_pad = _round_up(B, tm)
    if B_pad != B:
        xc = jnp.pad(xc, ((0, B_pad - B), (0, 0)))
    grid = (B_pad // tm,)

    # Weights / biases: constant block index -> stay resident in VMEM across
    # all batch tiles (DMA'd once).
    const = lambda a: pl.BlockSpec(a.shape, lambda i: (0,) * a.ndim)

    out = pl.pallas_call(
        _logreg_kernel,
        out_shape=jax.ShapeDtypeStruct((B_pad, ncls_pad), out_dtype),
        grid=grid,
        in_specs=[
            pl.BlockSpec((tm, ft_in), lambda i: (i, 0)),  # pipelined x tiles
            const(w1c), const(b1),
            const(w2c), const(b2),
            const(w3c), const(b3),
        ],
        out_specs=pl.BlockSpec((tm, ncls_pad), lambda i: (i, 0)),
        compiler_params=pltpu.CompilerParams(
            dimension_semantics=("parallel",),     # megacore-shard batch tiles
            vmem_limit_bytes=48 * 1024 * 1024,     # explicit; < 64 MiB (v7x)
        ),
    )(xc, w1c, b1, w2c, b2, w3c, b3)

    # Drop batch padding and the padded (zero) class lanes.
    return out[:B, :nb_classes]


# ------------------------- parameter construction -------------------------

def xavier_uniform(key, fan_in, fan_out, dtype=jnp.float32):
    # Matches torch.nn.init.xavier_uniform_ (gain=1.0).
    limit = jnp.sqrt(6.0 / (fan_in + fan_out))
    # PyTorch weight shape is (out, in); sample that, transpose to (in, out).
    w = jax.random.uniform(key, (fan_out, fan_in), dtype=dtype,
                           minval=-limit, maxval=limit)
    return w.T


def init_logreg_params(key, ft_in, nb_classes, dtype=jnp.float32):
    h1 = ft_in // 2
    h2 = ft_in // 4
    k1, k2, k3 = jax.random.split(key, 3)
    return {
        "w1": xavier_uniform(k1, ft_in, h1, dtype),
        "b1": jnp.zeros((1, h1), dtype),
        "w2": xavier_uniform(k2, h1, h2, dtype),
        "b2": jnp.zeros((1, h2), dtype),
        "w3": xavier_uniform(k3, h2, nb_classes, dtype),
        "b3": jnp.zeros((1, nb_classes), dtype),
    }


def _pad2(a, rows, cols):
    return jnp.pad(a, ((0, rows - a.shape[0]), (0, cols - a.shape[1])))


def pad_logreg_params(p):
    """Zero-pad hidden/class dims to multiples of 128 (done once, outside the
    kernel). Zero padding is exact: padded lanes stay 0 through relu and never
    contaminate real outputs; the wrapper slices them off."""
    ft_in = p["w1"].shape[0]
    h1, h2, ncls = p["w1"].shape[1], p["w2"].shape[1], p["w3"].shape[1]
    h1p, h2p, nclsp = (_round_up(h1, LANE), _round_up(h2, LANE),
                       _round_up(ncls, LANE))
    return {
        "w1": _pad2(p["w1"], ft_in, h1p), "b1": _pad2(p["b1"], 1, h1p),
        "w2": _pad2(p["w2"], h1p, h2p),   "b2": _pad2(p["b2"], 1, h2p),
        "w3": _pad2(p["w3"], h2p, nclsp), "b3": _pad2(p["b3"], 1, nclsp),
    }


def reference_forward(x, p):
    h = jnp.maximum(x @ p["w1"] + p["b1"], 0.0)
    h = jnp.maximum(h @ p["w2"] + p["b2"], 0.0)
    return h @ p["w3"] + p["b3"]


if __name__ == "__main__":
    key = jax.random.PRNGKey(0)
    k_x, k_p = jax.random.split(key)

    batch = 8
    ft_in = 32
    nb_classes = 4

    x = jax.random.normal(k_x, (batch, ft_in), dtype=jnp.float32)
    params = init_logreg_params(k_p, ft_in, nb_classes)
    padded = pad_logreg_params(params)
    ref = reference_forward(x, params)

    # f32 compute path (exact vs reference)
    out = logreg_forward(x, padded["w1"], padded["b1"],
                         padded["w2"], padded["b2"],
                         padded["w3"], padded["b3"],
                         nb_classes=nb_classes)
    out = jax.block_until_ready(out)
    assert out.shape == (batch, nb_classes)
    assert jnp.allclose(out, ref, atol=1e-5, rtol=1e-5), "f32 mismatch vs ref"

    # bf16 MXU path (recommended on v6e/v7x): f32 accumulation, looser tol
    out_bf16 = logreg_forward(x, padded["w1"], padded["b1"],
                              padded["w2"], padded["b2"],
                              padded["w3"], padded["b3"],
                              nb_classes=nb_classes,
                              compute_dtype=jnp.bfloat16)
    out_bf16 = jax.block_until_ready(out_bf16)
    assert out_bf16.shape == (batch, nb_classes)
    assert jnp.allclose(out_bf16, ref, atol=1e-1, rtol=1e-1), "bf16 mismatch"

    print("KERNEL_OK")
</pallas_src>

<mosaic_0001>
module attributes {stable_mosaic.version = 11 : i64} {
  func.func @_logreg_kernel(%arg0: i32, %arg1: memref<8x32xf32, #tpu.memory_space<vmem>>, %arg2: memref<32x128xf32, #tpu.memory_space<vmem>>, %arg3: memref<1x128xf32, #tpu.memory_space<vmem>>, %arg4: memref<128x128xf32, #tpu.memory_space<vmem>>, %arg5: memref<1x128xf32, #tpu.memory_space<vmem>>, %arg6: memref<128x128xf32, #tpu.memory_space<vmem>>, %arg7: memref<1x128xf32, #tpu.memory_space<vmem>>, %arg8: memref<8x128xf32, #tpu.memory_space<vmem>>) attributes {dimension_semantics = [#tpu.dimension_semantics<parallel>], iteration_bounds = array<i64: 1>, scalar_prefetch = 0 : i64, scratch_operands = 0 : i64, tpu.core_type = #tpu.core_type<tc>, window_params = [{transform_indices = @transform_0, window_bounds = array<i64: 8, 32>}, {pipeline_mode = #tpu.pipeline_mode<synchronous>, transform_indices = @transform_1, window_bounds = array<i64: 32, 128>}, {pipeline_mode = #tpu.pipeline_mode<synchronous>, transform_indices = @transform_2, window_bounds = array<i64: 1, 128>}, {pipeline_mode = #tpu.pipeline_mode<synchronous>, transform_indices = @transform_3, window_bounds = array<i64: 128, 128>}, {pipeline_mode = #tpu.pipeline_mode<synchronous>, transform_indices = @transform_4, window_bounds = array<i64: 1, 128>}, {pipeline_mode = #tpu.pipeline_mode<synchronous>, transform_indices = @transform_5, window_bounds = array<i64: 128, 128>}, {pipeline_mode = #tpu.pipeline_mode<synchronous>, transform_indices = @transform_6, window_bounds = array<i64: 1, 128>}, {transform_indices = @transform_7, window_bounds = array<i64: 8, 128>}]} {
    %c0 = arith.constant 0 : index
    %c0_0 = arith.constant 0 : index
    %0 = vector.load %arg1[%c0, %c0_0] : memref<8x32xf32, #tpu.memory_space<vmem>>, vector<8x32xf32>
    %c0_1 = arith.constant 0 : index
    %c0_2 = arith.constant 0 : index
    %1 = vector.load %arg2[%c0_1, %c0_2] : memref<32x128xf32, #tpu.memory_space<vmem>>, vector<32x128xf32>
    %cst = arith.constant dense<0.000000e+00> : vector<8x128xf32>
    %2 = tpu.matmul %0, %1, %cst {dimension_numbers = #tpu.dot_dimension_numbers<[1], [0], [0], [1], [0, 0, 1, 1], [], []>} : vector<8x32xf32>, vector<32x128xf32>, vector<8x128xf32> -> vector<8x128xf32>
    %c0_3 = arith.constant 0 : index
    %c0_4 = arith.constant 0 : index
    %3 = vector.load %arg3[%c0_3, %c0_4] : memref<1x128xf32, #tpu.memory_space<vmem>>, vector<1x128xf32>
    %4 = vector.broadcast %3 : vector<1x128xf32> to vector<8x128xf32>
    %5 = arith.addf %2, %4 : vector<8x128xf32>
    %cst_5 = arith.constant 0.000000e+00 : f32
    %6 = vector.broadcast %cst_5 : f32 to vector<8x128xf32>
    %7 = arith.maximumf %5, %6 : vector<8x128xf32>
    %c0_6 = arith.constant 0 : index
    %c0_7 = arith.constant 0 : index
    %8 = vector.load %arg4[%c0_6, %c0_7] : memref<128x128xf32, #tpu.memory_space<vmem>>, vector<128x128xf32>
    %cst_8 = arith.constant dense<0.000000e+00> : vector<8x128xf32>
    %9 = tpu.matmul %7, %8, %cst_8 {dimension_numbers = #tpu.dot_dimension_numbers<[1], [0], [0], [1], [0, 0, 1, 1], [], []>} : vector<8x128xf32>, vector<128x128xf32>, vector<8x128xf32> -> vector<8x128xf32>
    %c0_9 = arith.constant 0 : index
    %c0_10 = arith.constant 0 : index
    %10 = vector.load %arg5[%c0_9, %c0_10] : memref<1x128xf32, #tpu.memory_space<vmem>>, vector<1x128xf32>
    %11 = vector.broadcast %10 : vector<1x128xf32> to vector<8x128xf32>
    %12 = arith.addf %9, %11 : vector<8x128xf32>
    %cst_11 = arith.constant 0.000000e+00 : f32
    %13 = vector.broadcast %cst_11 : f32 to vector<8x128xf32>
    %14 = arith.maximumf %12, %13 : vector<8x128xf32>
    %c0_12 = arith.constant 0 : index
    %c0_13 = arith.constant 0 : index
    %15 = vector.load %arg6[%c0_12, %c0_13] : memref<128x128xf32, #tpu.memory_space<vmem>>, vector<128x128xf32>
    %cst_14 = arith.constant dense<0.000000e+00> : vector<8x128xf32>
    %16 = tpu.matmul %14, %15, %cst_14 {dimension_numbers = #tpu.dot_dimension_numbers<[1], [0], [0], [1], [0, 0, 1, 1], [], []>} : vector<8x128xf32>, vector<128x128xf32>, vector<8x128xf32> -> vector<8x128xf32>
    %c0_15 = arith.constant 0 : index
    %c0_16 = arith.constant 0 : index
    %17 = vector.load %arg7[%c0_15, %c0_16] : memref<1x128xf32, #tpu.memory_space<vmem>>, vector<1x128xf32>
    %18 = vector.broadcast %17 : vector<1x128xf32> to vector<8x128xf32>
    %19 = arith.addf %16, %18 : vector<8x128xf32>
    %c0_17 = arith.constant 0 : index
    %c0_18 = arith.constant 0 : index
    %20 = vector.load %arg8[%c0_17, %c0_18] : memref<8x128xf32, #tpu.memory_space<vmem>>, vector<8x128xf32>
    tpu.vector_store %arg8[%c0_17, %c0_18], %19 {strides = array<i32>} : memref<8x128xf32, #tpu.memory_space<vmem>>, vector<8x128xf32>,
    return
  }
  func.func @transform_0(%arg0: i32) -> (i32, i32) {
    %c0_i32 = arith.constant 0 : i32
    %c0_i32_0 = arith.constant 0 : i32
    return %arg0, %c0_i32 : i32, i32
  }
  func.func @transform_1(%arg0: i32) -> (i32, i32) {
    %c0_i32 = arith.constant 0 : i32
    %c0_i32_0 = arith.constant 0 : i32
    %c0_i32_1 = arith.constant 0 : i32
    return %c0_i32, %c0_i32_0 : i32, i32
  }
  func.func @transform_2(%arg0: i32) -> (i32, i32) {
    %c0_i32 = arith.constant 0 : i32
    %c0_i32_0 = arith.constant 0 : i32
    %c0_i32_1 = arith.constant 0 : i32
    return %c0_i32, %c0_i32_0 : i32, i32
  }
  func.func @transform_3(%arg0: i32) -> (i32, i32) {
    %c0_i32 = arith.constant 0 : i32
    %c0_i32_0 = arith.constant 0 : i32
    %c0_i32_1 = arith.constant 0 : i32
    return %c0_i32, %c0_i32_0 : i32, i32
  }
  func.func @transform_4(%arg0: i32) -> (i32, i32) {
    %c0_i32 = arith.constant 0 : i32
    %c0_i32_0 = arith.constant 0 : i32
    %c0_i32_1 = arith.constant 0 : i32
    return %c0_i32, %c0_i32_0 : i32, i32
  }
  func.func @transform_5(%arg0: i32) -> (i32, i32) {
    %c0_i32 = arith.constant 0 : i32
    %c0_i32_0 = arith.constant 0 : i32
    %c0_i32_1 = arith.constant 0 : i32
    return %c0_i32, %c0_i32_0 : i32, i32
  }
  func.func @transform_6(%arg0: i32) -> (i32, i32) {
    %c0_i32 = arith.constant 0 : i32
    %c0_i32_0 = arith.constant 0 : i32
    %c0_i32_1 = arith.constant 0 : i32
    return %c0_i32, %c0_i32_0 : i32, i32
  }
  func.func @transform_7(%arg0: i32) -> (i32, i32) {
    %c0_i32 = arith.constant 0 : i32
    %c0_i32_0 = arith.constant 0 : i32
    return %arg0, %c0_i32 : i32, i32
  }
}

</mosaic_0001>

<bundles_post_ra>
// kernel: logreg_forward.1
= control target key start
LH: loop header
LB: loop body
LE: loop exit
PB: predicated region body
PF: predicated region fallthrough
CT: control target
= control target key end

     0   :  { %12 = vsyncpa [#allocation3], 0  ;;  %s781_s0 = inlined_call_operand.hbm [shape: f32[8,32], index: 0, kind: input, shape index: {}]   ;;  %s782_s1 = inlined_call_operand.hbm [shape: f32[32,128], index: 1, kind: input, shape index: {}]   ;;  %s783_s2 = inlined_call_operand.vmem [shape: f32[1,128], index: 2, kind: input, shape index: {}]   ;;  %s784_s3 = inlined_call_operand.hbm [shape: f32[128,128], index: 3, kind: input, shape index: {}]   ;;  %s785_s4 = inlined_call_operand.vmem [shape: f32[1,128], index: 4, kind: input, shape index: {}]   ;;  %s786_s5 = inlined_call_operand.hbm [shape: f32[128,128], index: 5, kind: input, shape index: {}]   ;;  %s787_s6 = inlined_call_operand.vmem [shape: f32[1,128], index: 6, kind: input, shape index: {}]   ;;  %s788_s7 = inlined_call_operand.vmem [shape: f32[8,128], index: 7, kind: output, shape index: {}]  }
   0x1   :  { %13 = vsyncpa [#allocation5], 0 }
   0x2   :  { %14 = vsyncpa [#allocation8], 0  ;;  %s642_s24 = smov [#allocation4]   ;;  %s548_s28 = scalar_lea.hbm %s782_s1, 512 }
   0x3   :  { %s30_s25 = sshll.u32 %s642_s24, 4  ;;  %p549_p0 = scmp.ne.s32.totalorder %s782_s1, %s548_s28  ;;  %s31_s25 = int_to_ptr.vmem [resolvable:$true] %s30_s25 }
   0x4   :  { %p552_p1 = scmp.lt.u32.totalorder %s548_s28, %s782_s1 }
   0x6   :  { %p554_p2 = pnand %p552_p1, %p549_p0 }
   0x8   :  { %557 = shalt.err (!%p554_p2)
}
   0x9   :  { %s558_s10 = scalar_lea.vmem %s31_s25, 512  ;;  %p563_p4 = scmp.lt.s32.totalorder %s31_s25, %s31_s25 }
   0xa   :  { %p559_p3 = scmp.ne.s32.totalorder %s31_s25, %s558_s10  ;;  %p564_p5 = scmp.lt.s32.totalorder %s558_s10, %s558_s10 }
   0xc   :  { %p565_p6 = por %p564_p5, %p563_p4 }
   0xe   :  { %p566_p7 = pnand %p565_p6, %p559_p3 }
  0x10   :  { %569 = shalt.err (!%p566_p7)
}
  0x11   :  { %s643_s11 = smov 128   ;;  %s644_s12 = smov 8  }
  0x12   :  { %36 = dma.hbm_to_vmem [thread:$0]  %s782_s1, 512, %s31_s25, [#allocation5], %s643_s11, %s643_s11, %s644_s12  }
  0x13   :  { %s645_s15 = smov [#allocation2]   ;;  %s646_s17 = smov [#allocation6]  }
  0x14   :  { %s21_s16 = sshll.u32 %s645_s15, 4  ;;  %s44_s18 = sshll.u32 %s646_s17, 4  ;;  %s22_s16 = int_to_ptr.vmem [resolvable:$true] %s21_s16  ;;  %s45_s18 = int_to_ptr.vmem [resolvable:$true] %s44_s18 }
  0x15   :  { %s570_s21 = scalar_lea.hbm %s781_s0, 128 }
  0x16   :  { %p571_p8 = scmp.ne.s32.totalorder %s781_s0, %s570_s21  ;;  %p574_p9 = scmp.lt.u32.totalorder %s570_s21, %s781_s0 }
  0x18   :  { %p576_p10 = pnand %p574_p9, %p571_p8 }
  0x1a   :  { %579 = shalt.err (!%p576_p10)
}
  0x1b   :  { %s580_s1 = scalar_lea.vmem %s22_s16, 128  ;;  %p585_p12 = scmp.lt.s32.totalorder %s22_s16, %s22_s16 }
  0x1c   :  { %p581_p11 = scmp.ne.s32.totalorder %s22_s16, %s580_s1  ;;  %p586_p13 = scmp.lt.s32.totalorder %s580_s1, %s580_s1 }
  0x1e   :  { %p587_p0 = por %p586_p13, %p585_p12 }
  0x20   :  { %p588_p1 = pnand %p587_p0, %p581_p11 }
  0x22   :  { %591 = shalt.err (!%p588_p1)
}
  0x23   :  { %24 = dma.hbm_to_vmem [thread:$0]  %s781_s0, 128, %s22_s16, [#allocation3]  }
  0x24   :  { %s592_s30 = scalar_lea.hbm %s784_s3, 2048 }
  0x25   :  { %p593_p2 = scmp.ne.s32.totalorder %s784_s3, %s592_s30  ;;  %p596_p3 = scmp.lt.u32.totalorder %s592_s30, %s784_s3 }
  0x27   :  { %p598_p4 = pnand %p596_p3, %p593_p2 }
  0x29   :  { %601 = shalt.err (!%p598_p4)
}
  0x2a   :  { %s602_s14 = scalar_lea.vmem %s45_s18, 2048  ;;  %p607_p6 = scmp.lt.s32.totalorder %s45_s18, %s45_s18 }
  0x2b   :  { %p603_p5 = scmp.ne.s32.totalorder %s45_s18, %s602_s14  ;;  %p608_p7 = scmp.lt.s32.totalorder %s602_s14, %s602_s14 }
  0x2d   :  { %p609_p8 = por %p608_p7, %p607_p6 }
  0x2f   :  { %p610_p9 = pnand %p609_p8, %p603_p5 }
  0x31   :  { %613 = shalt.err (!%p610_p9)
}
  0x32   :  { %50 = dma.hbm_to_vmem [thread:$0]  %s784_s3, 2048, %s45_s18, [#allocation5], %s643_s11, %s643_s11, %s644_s12  }
  0x33   :  { %s647_s16 = smov [#allocation7]   ;;  %s614_s21 = scalar_lea.hbm %s786_s5, 2048 }
  0x34   :  { %s58_s17 = sshll.u32 %s647_s16, 4  ;;  %p615_p10 = scmp.ne.s32.totalorder %s786_s5, %s614_s21  ;;  %s59_s17 = int_to_ptr.vmem [resolvable:$true] %s58_s17 }
  0x35   :  { %p618_p11 = scmp.lt.u32.totalorder %s614_s21, %s786_s5 }
  0x37   :  { %p620_p12 = pnand %p618_p11, %p615_p10 }
  0x39   :  { %623 = shalt.err (!%p620_p12)
}
  0x3a   :  { %s624_s1 = scalar_lea.vmem %s59_s17, 2048  ;;  %p629_p0 = scmp.lt.s32.totalorder %s59_s17, %s59_s17 }
  0x3b   :  { %p625_p13 = scmp.ne.s32.totalorder %s59_s17, %s624_s1  ;;  %p630_p1 = scmp.lt.s32.totalorder %s624_s1, %s624_s1 }
  0x3d   :  { %p631_p2 = por %p630_p1, %p629_p0 }
  0x3f   :  { %p632_p3 = pnand %p631_p2, %p625_p13 }
  0x41   :  { %635 = shalt.err (!%p632_p3)
}
  0x42   :  { %64 = dma.hbm_to_vmem [thread:$0]  %s786_s5, 2048, %s59_s17, [#allocation8], %s643_s11, %s643_s11, %s644_s12  }
  0x43   :  { %636 = dma.done.wait [#allocation3], 128  }
  0x44   :  { %637 = vsyncadd [#allocation3], 4294967168 }
  0x45   :  { %638 = dma.done.wait [#allocation5], 2560  }
  0x46   :  { %639 = vsyncadd [#allocation5], 4294964736 }
  0x47   :  { %640 = dma.done.wait [#allocation8], 2048  }
  0x48   :  { %641 = vsyncadd [#allocation8], 4294965248  ;;  %v648_v0 = vmov 0.0|0.0   ;;  %vm649_vm0 = vmmov 0   ;;  %v650_v1 = vmov 0.0   ;;  %v80_v2 = vld [vmem:[#allocation4] sm:$0xff] }
  0x49   :  { %485 = vmatprep.subr.bf16.mxu0 %v648_v0  ;;  %412 = vmatprep.mubr.msk.f32.mxu0 %vm649_vm0, %v650_v1  ;;  %v81_v3 = vld [vmem:[#allocation4 + $0x8] sm:$0xff]  ;;  %v82_v4 = vld [vmem:[#allocation4 + $0x10] sm:$0xff]  ;;  %v83_v6 = vld [vmem:[#allocation4 + $0x18] sm:$0xff]  ;;  %vm91_vm1 = vcmask 261120  }
  0x4a   :  { %491 = vmatprep.subr.bf16.mxu1 %v648_v0  ;;  %447 = vmatprep.mubr.msk.f32.mxu1 %vm649_vm0, %v650_v1  ;;  %v486_v5 = vpack.c.bf16 %v81_v3, %v80_v2  ;;  %v166_v7 = vld [vmem:[#allocation6] sm:$0xff]  ;;  %v167_v8 = vld [vmem:[#allocation6 + $0x8] sm:$0xff]  ;;  %v168_v9 = vld [vmem:[#allocation6 + $0x10] sm:$0xff]  ;;  %v489_v11 = vpack.c.bf16 %v83_v6, %v82_v4 }
  0x4b   :  { %v169_v10 = vld [vmem:[#allocation6 + $0x18] sm:$0xff]  ;;  %v492_v12 = vpack.c.bf16 %v167_v8, %v166_v7  ;;  %v170_v14 = vld [vmem:[#allocation6 + $0x20] sm:$0xff]  ;;  %v171_v15 = vld [vmem:[#allocation6 + $0x28] sm:$0xff] }
  0x4c   :  { %487 = vmatpush3.bf16.msra.mxu0 %v486_v5  ;;  %v495_v13 = vpack.c.bf16 %v169_v10, %v168_v9  ;;  %v79_v16 = vld [vmem:[#allocation2] sm:$0xff]  ;;  %v498_v17 = vpack.c.bf16 %v171_v15, %v170_v14  ;;  %v172_v18 = vld [vmem:[#allocation6 + $0x30] sm:$0xff]  ;;  %v174_v21 = vld [vmem:[#allocation6 + $0x40] sm:$0xff] }
  0x4d   :  { %488 = vmatprep.subr.bf16.mxu0 %v648_v0  ;;  %493 = vmatpush3.bf16.msra.mxu1 %v492_v12  ;;  %v173_v19 = vld [vmem:[#allocation6 + $0x38] sm:$0xff]  ;;  %v175_v22 = vld [vmem:[#allocation6 + $0x48] sm:$0xff]  ;;  %v176_v24 = vld [vmem:[#allocation6 + $0x50] sm:$0xff] }
  0x4e   :  { %494 = vmatprep.subr.bf16.mxu1 %v648_v0  ;;  %v501_v20 = vpack.c.bf16 %v173_v19, %v172_v18  ;;  %v504_v23 = vpack.c.bf16 %v175_v22, %v174_v21  ;;  %v177_v25 = vld [vmem:[#allocation6 + $0x58] sm:$0xff]  ;;  %v178_v27 = vld [vmem:[#allocation6 + $0x60] sm:$0xff]  ;;  %v179_v28 = vld [vmem:[#allocation6 + $0x68] sm:$0xff] }
  0x4f   :  { %v507_v26 = vpack.c.bf16 %v177_v25, %v176_v24  ;;  %v510_v29 = vpack.c.bf16 %v179_v28, %v178_v27  ;;  %v180_v30 = vld [vmem:[#allocation6 + $0x70] sm:$0xff]  ;;  %v181_v31 = vld [vmem:[#allocation6 + $0x78] sm:$0xff]  ;;  %v260_v33 = vld [vmem:[#allocation7] sm:$0xff] }
  0x50   :  { %490 = vmatpush3.bf16.msra.mxu0 %v489_v11  ;;  %v513_v32 = vpack.c.bf16 %v181_v31, %v180_v30  ;;  %v261_v34 = vld [vmem:[#allocation7 + $0x8] sm:$0xff]  ;;  %v262_v35 = vld [vmem:[#allocation7 + $0x10] sm:$0xff]  ;;  %v263_v37 = vld [vmem:[#allocation7 + $0x18] sm:$0xff] }
  0x51   :  { %515 = vmatprep.subr.bf16.mxu0 %v648_v0  ;;  %496 = vmatpush3.bf16.msra.mxu1 %v495_v13  ;;  %v516_v36 = vpack.c.bf16 %v261_v34, %v260_v33  ;;  %v519_v38 = vpack.c.bf16 %v263_v37, %v262_v35  ;;  %v264_v39 = vld [vmem:[#allocation7 + $0x20] sm:$0xff]  ;;  %v265_v40 = vld [vmem:[#allocation7 + $0x28] sm:$0xff]  ;;  %v266_v42 = vld [vmem:[#allocation7 + $0x30] sm:$0xff] }
  0x52   :  { %497 = vmatprep.subr.bf16.mxu1 %v648_v0  ;;  %v522_v41 = vpack.c.bf16 %v265_v40, %v264_v39  ;;  %v267_v43 = vld [vmem:[#allocation7 + $0x38] sm:$0xff]  ;;  %v268_v45 = vld [vmem:[#allocation7 + $0x40] sm:$0xff]  ;;  %v269_v46 = vld [vmem:[#allocation7 + $0x48] sm:$0xff] }
  0x53   :  { %413 = vmatmul.mubr.msk.f32.vlgmr.msra.gmra.mrb[0].mxu0 %vm91_vm1, %v79_v16  ;;  %v525_v44 = vpack.c.bf16 %v267_v43, %v266_v42  ;;  %v528_v47 = vpack.c.bf16 %v269_v46, %v268_v45  ;;  %v270_v48 = vld [vmem:[#allocation7 + $0x50] sm:$0xff]  ;;  %v271_v49 = vld [vmem:[#allocation7 + $0x58] sm:$0xff]  ;;  %v272_v51 = vld [vmem:[#allocation7 + $0x60] sm:$0xff] }
  0x54   :  { %482 = vmatprep.mubr.msk.f32.mxu0 %vm649_vm0, %v650_v1  ;;  %517 = vmatpush3.bf16.msra.mxu0 %v516_v36  ;;  %v531_v50 = vpack.c.bf16 %v271_v49, %v270_v48  ;;  %v273_v52 = vld [vmem:[#allocation7 + $0x68] sm:$0xff]  ;;  %v361_v54 = vld [vmem:[%s783_s2] ss:$0 sm:$0xff]  ;;  %v274_v59 = vld [vmem:[#allocation7 + $0x70] sm:$0xff] }
  0x55   :  { %499 = vmatpush3.bf16.msra.mxu1 %v498_v17  ;;  %518 = vmatprep.subr.bf16.mxu0 %v648_v0  ;;  %v534_v53 = vpack.c.bf16 %v273_v52, %v272_v51  ;;  %v275_v60 = vld [vmem:[#allocation7 + $0x78] sm:$0xff] }
  0x56   :  { %500 = vmatprep.subr.bf16.mxu1 %v648_v0  ;;  %v537_v61 = vpack.c.bf16 %v275_v60, %v274_v59  ;;  %v363_v62 = vld [vmem:[%s785_s4] ss:$0 sm:$0xff] }
  0x57   :  { %v364_v3 = vld [vmem:[%s787_s6] ss:$0 sm:$0xff] }
  0x58   :  { %520 = vmatpush3.bf16.msra.mxu0 %v519_v38 }
  0x59   :  { %502 = vmatpush3.bf16.msra.mxu1 %v501_v20  ;;  %521 = vmatprep.subr.bf16.mxu0 %v648_v0 }
  0x5a   :  { %503 = vmatprep.subr.bf16.mxu1 %v648_v0 }
  0x5c   :  { %523 = vmatpush3.bf16.msra.mxu0 %v522_v41 }
  0x5d   :  { %505 = vmatpush3.bf16.msra.mxu1 %v504_v23  ;;  %524 = vmatprep.subr.bf16.mxu0 %v648_v0 }
  0x5e   :  { %506 = vmatprep.subr.bf16.mxu1 %v648_v0 }
  0x60   :  { %526 = vmatpush3.bf16.msra.mxu0 %v525_v44 }
  0x61   :  { %508 = vmatpush3.bf16.msra.mxu1 %v507_v26  ;;  %527 = vmatprep.subr.bf16.mxu0 %v648_v0 }
  0x62   :  { %509 = vmatprep.subr.bf16.mxu1 %v648_v0 }
  0x64   :  { %529 = vmatpush3.bf16.msra.mxu0 %v528_v47 }
  0x65   :  { %511 = vmatpush3.bf16.msra.mxu1 %v510_v29  ;;  %530 = vmatprep.subr.bf16.mxu0 %v648_v0 }
  0x66   :  { %512 = vmatprep.subr.bf16.mxu1 %v648_v0 }
  0x68   :  { %532 = vmatpush3.bf16.msra.mxu0 %v531_v50 }
  0x69   :  { %514 = vmatpush3.bf16.msra.mxu1 %v513_v32  ;;  %533 = vmatprep.subr.bf16.mxu0 %v648_v0 }
  0x6c   :  { %535 = vmatpush3.bf16.msra.mxu0 %v534_v53 }
  0x6d   :  { %536 = vmatprep.subr.bf16.mxu0 %v648_v0 }
  0x70   :  { %538 = vmatpush3.bf16.msra.mxu0 %v537_v61 }
 0x126   :  { %v161_v55 = vpop.f32.mrb[0].mxu0 }
 0x127   :  { %v162_v56 = vadd.f32 %v361_v54, %v161_v55  ;;  %v414_v57 = vpop.f32.mrb[1].mxu0 }
 0x129   :  { %v165_v58 = vmax.f32 %v162_v56, 0.0 }
 0x12b   :  { %448 = vmatmul.mubr.f32.vlgmr.msra.gmra.mrb[0].mxu1 %v165_v58 }
 0x1fe   :  { %v255_v63 = vpop.f32.mrb[0].mxu1 }
 0x1ff   :  { %v256_v1 = vadd.f32 %v363_v62, %v255_v63  ;;  %v449_v0 = vpop.f32.mrb[1].mxu1 }
 0x201   :  { %v259_v2 = vmax.f32 %v256_v1, 0.0 }
 0x203   :  { %483 = vmatmul.mubr.f32.vlgmr.msra.gmra.mrb[2].mxu0 %v259_v2 }
 0x2d6   :  { %v349_v4 = vpop.f32.mrb[2].mxu0 }
 0x2d7   :  { %v350_v5 = vadd.f32 %v364_v3, %v349_v4  ;;  %v484_v6 = vpop.f32.mrb[3].mxu0 }
 0x2d9   :  { %353 = vst [vmem:[%s788_s7] sm:$0xff] %v350_v5 }
 0x2da   :  { %358 = vsyncpa [#allocation3], 1 }
 0x2db   :  { %359 = vsyncpa [#allocation5], 1 }
 0x2dc   :  { %360 = vsyncpa [#allocation8], 1 }

</bundles_post_ra>
